<compile_context>
chip_gen: v5e
topology: v5e:2x2
jax: 0.10.0
libtpu: 0.0.40
codegen_flags: <defaults>
</compile_context>

<pallas_src>
import functools

import jax
import jax.numpy as jnp
from jax.experimental import pallas as pl
from jax.experimental.pallas import tpu as pltpu

EPS = 1e-5                      # nn.BatchNorm2d default eps
MATMUL_DTYPE = jnp.bfloat16     # MXU operand dtype (accumulation stays f32)


def _conv_stats_kernel(xq_ref, w_ref, y_ref, sum_ref, ssq_ref,
                       *, kh_sz, kw_sz, stride, hq, ow, cpad):
    """One output row (OW pixels) of the strided conv + BN-stat accumulation.

    xq_ref : (1, stride*stride*Hq, Wq, Cin)  stride-parity rearranged input (bf16)
    w_ref  : (KH*KW, Cin, Cpad)              conv taps (bf16, Cout padded to Cpad)
    y_ref  : (OW, Cpad) f32                  conv output rows for grid point (n, oh)
    sum_ref/ssq_ref : (OW, Cpad) f32         per-image accumulators over the oh axis
    """
    oh = pl.program_id(1)

    @pl.when(oh == 0)
    def _init():
        sum_ref[...] = jnp.zeros_like(sum_ref)
        ssq_ref[...] = jnp.zeros_like(ssq_ref)

    acc = jnp.zeros((ow, cpad), jnp.float32)
    # 3x3 window expansion entirely in VMEM: 9 accumulating MXU matmuls over
    # contiguous slices of the parity-rearranged input (no strided gathers).
    for ikh in range(kh_sz):
        for ikw in range(kw_sz):
            ph, dh = ikh % stride, ikh // stride
            pw, dw = ikw % stride, ikw // stride
            parity = ph * stride + pw
            row = oh + (parity * hq + dh)                 # dynamic outer index
            win = xq_ref[0, row, pl.ds(dw, ow), :]        # (OW, Cin)   bf16
            tap = w_ref[ikh * kw_sz + ikw]                # (Cin, Cpad) bf16
            acc = acc + jnp.dot(win, tap, preferred_element_type=jnp.float32)

    y_ref[...] = acc
    sum_ref[...] += acc
    ssq_ref[...] += acc * acc


def _bn_relu_kernel(y_ref, scale_ref, shift_ref, o_ref):
    """y * scale + shift, then ReLU.  scale/shift are precomputed per channel."""
    o_ref[...] = jnp.maximum(
        y_ref[...] * scale_ref[...] + shift_ref[...], 0.0).astype(o_ref.dtype)


@functools.partial(jax.jit, static_argnames=("stride", "padding"))
def conv_block_forward(x, weight, gamma, beta, *, stride=2, padding=1):
    """x: (N, Cin, H, W) NCHW; weight: (Cout, Cin, KH, KW); gamma/beta: (Cout,)."""
    N, Cin, H, W = x.shape
    Cout, Cin2, KH, KW = weight.shape
    assert Cin2 == Cin
    assert stride == 2 and KH == 3 and KW == 3 and padding == 1, (
        "kernel specialized to the ConvBlock defaults (3x3, stride 2, pad 1)")

    OH = (H + 2 * padding - KH) // stride + 1
    OW = (W + 2 * padding - KW) // stride + 1
    Hp, Wp = H + 2 * padding, W + 2 * padding
    assert Hp % stride == 0 and Wp % stride == 0, "H, W must be even"
    Hq, Wq = Hp // stride, Wp // stride
    # in-kernel tap windows must stay inside the parity grids
    assert (OH - 1) + (KH - 1) // stride <= Hq - 1
    assert (OW - 1) + (KW - 1) // stride <= Wq - 1
    assert OW % 8 == 0, "OW must be a multiple of 8 (sublane tile)"

    Cpad = ((Cout + 127) // 128) * 128        # lane-dense channel padding
    M = N * OH * OW

    # ---- stride-parity ("space-to-batch") rearrangement: same element count as
    # the input (NOT a 9x-duplicated im2col), so input-side HBM traffic stays ~1x.
    x_nhwc = jnp.transpose(x, (0, 2, 3, 1))
    xp = jnp.pad(x_nhwc, ((0, 0), (padding, padding), (padding, padding), (0, 0)))
    xq = xp.reshape(N, Hq, stride, Wq, stride, Cin)
    xq = jnp.transpose(xq, (0, 2, 4, 1, 3, 5))              # (N, sh, sw, Hq, Wq, Cin)
    xq = xq.reshape(N, stride * stride * Hq, Wq, Cin).astype(MATMUL_DTYPE)

    # weights: (Cout, Cin, KH, KW) -> (KH*KW, Cin, Cpad), zero-padded channels
    wq = jnp.transpose(weight, (2, 3, 1, 0)).reshape(KH * KW, Cin, Cout)
    wq = jnp.pad(wq, ((0, 0), (0, 0), (0, Cpad - Cout))).astype(MATMUL_DTYPE)

    kernel1 = functools.partial(
        _conv_stats_kernel, kh_sz=KH, kw_sz=KW, stride=stride,
        hq=Hq, ow=OW, cpad=Cpad)

    flops = 2 * M * Cin * KH * KW * Cpad
    bytes_accessed = (xq.size * xq.dtype.itemsize
                      + wq.size * wq.dtype.itemsize
                      + (M + 2 * N * OW) * Cpad * 4)

    # ---- pass 1: conv + per-channel sum / sum-of-squares accumulation --------
    y2d, sum_b, ssq_b = pl.pallas_call(
        kernel1,
        out_shape=(
            jax.ShapeDtypeStruct((M, Cpad), jnp.float32),        # conv output
            jax.ShapeDtypeStruct((N * OW, Cpad), jnp.float32),   # per-image sum
            jax.ShapeDtypeStruct((N * OW, Cpad), jnp.float32),   # per-image sumsq
        ),
        grid=(N, OH),
        in_specs=[
            pl.BlockSpec((1, stride * stride * Hq, Wq, Cin),
                         lambda n, oh: (n, 0, 0, 0)),
            pl.BlockSpec((KH * KW, Cin, Cpad), lambda n, oh: (0, 0, 0)),
        ],
        out_specs=(
            pl.BlockSpec((OW, Cpad), lambda n, oh: (n * OH + oh, 0)),
            pl.BlockSpec((OW, Cpad), lambda n, oh: (n, 0)),      # revisited over oh
            pl.BlockSpec((OW, Cpad), lambda n, oh: (n, 0)),      # revisited over oh
        ),
        compiler_params=pltpu.CompilerParams(
            dimension_semantics=("parallel", "arbitrary")),
        cost_estimate=pl.CostEstimate(
            flops=flops, transcendentals=0, bytes_accessed=bytes_accessed),
    )(xq, wq)

    # ---- tiny JAX reduction: global batch stats -> per-channel scale / shift --
    count = jnp.float32(M)
    ch_sum = jnp.sum(sum_b, axis=0)[:Cout]
    ch_ssq = jnp.sum(ssq_b, axis=0)[:Cout]
    mean = ch_sum / count
    var = ch_ssq / count - mean * mean              # biased variance (PyTorch BN fwd)
    inv = jax.lax.rsqrt(var + EPS)
    scale = gamma.astype(jnp.float32) * inv
    shift = beta.astype(jnp.float32) - mean * scale
    scale_p = jnp.pad(scale, (0, Cpad - Cout)).reshape(1, Cpad)   # pad chans: 0
    shift_p = jnp.pad(shift, (0, Cpad - Cout)).reshape(1, Cpad)   # pad chans: 0

    # ---- pass 2: y * scale + shift, ReLU (lane-dense tiles) -------------------
    TM = OW
    while TM * 2 <= 1024 and M % (TM * 2) == 0:
        TM *= 2
    out2d = pl.pallas_call(
        _bn_relu_kernel,
        out_shape=jax.ShapeDtypeStruct((M, Cpad), jnp.float32),
        grid=(M // TM,),
        in_specs=[
            pl.BlockSpec((TM, Cpad), lambda i: (i, 0)),
            pl.BlockSpec((1, Cpad), lambda i: (0, 0)),
            pl.BlockSpec((1, Cpad), lambda i: (0, 0)),
        ],
        out_specs=pl.BlockSpec((TM, Cpad), lambda i: (i, 0)),
        compiler_params=pltpu.CompilerParams(dimension_semantics=("parallel",)),
    )(y2d, scale_p, shift_p)

    # back to NCHW: transpose on the lane-aligned layout, then drop pad channels
    out = out2d.reshape(N, OH, OW, Cpad)
    out = jnp.transpose(out, (0, 3, 1, 2))[:, :Cout]
    return out


def reference_forward(x, weight, gamma, beta, *, stride=2, padding=1):
    """Plain-JAX reference (same bf16 matmul-operand precision, f32 accumulation)."""
    y = jax.lax.conv_general_dilated(
        x.astype(MATMUL_DTYPE), weight.astype(MATMUL_DTYPE),
        window_strides=(stride, stride),
        padding=((padding, padding), (padding, padding)),
        dimension_numbers=("NCHW", "OIHW", "NCHW"),
        preferred_element_type=jnp.float32)
    mean = jnp.mean(y, axis=(0, 2, 3), keepdims=True)
    var = jnp.mean(jnp.square(y - mean), axis=(0, 2, 3), keepdims=True)
    yn = (y - mean) * jax.lax.rsqrt(var + EPS)
    yn = yn * gamma.reshape(1, -1, 1, 1) + beta.reshape(1, -1, 1, 1)
    return jnp.maximum(yn, 0.0)


if __name__ == "__main__":
    key = jax.random.PRNGKey(0)
    kx, kw, kg, kb = jax.random.split(key, 4)

    N, Cin, H, W = 2, 4, 16, 16
    Cout, KH, KW = 8, 3, 3

    x = jax.random.normal(kx, (N, Cin, H, W), dtype=jnp.float32)
    weight = jax.random.normal(kw, (Cout, Cin, KH, KW), dtype=jnp.float32) * 0.1
    gamma = 1.0 + 0.1 * jax.random.normal(kg, (Cout,), dtype=jnp.float32)
    beta = 0.1 * jax.random.normal(kb, (Cout,), dtype=jnp.float32)

    out = conv_block_forward(x, weight, gamma, beta)
    out = jax.block_until_ready(out)

    ref = reference_forward(x, weight, gamma, beta)
    assert out.shape == (N, Cout, H // 2, W // 2), out.shape
    max_err = float(jnp.max(jnp.abs(out - ref)))
    assert max_err < 2e-3, max_err   # bf16 matmul operands, f32 accumulation/BN

    print("KERNEL_OK")
</pallas_src>

<mosaic_0001>
module attributes {stable_mosaic.version = 11 : i64} {
  func.func @_conv_stats_kernel(%arg0: i32, %arg1: i32, %arg2: memref<1x36x9x4xbf16, #tpu.memory_space<vmem>>, %arg3: memref<9x4x128xbf16, #tpu.memory_space<vmem>>, %arg4: memref<8x128xf32, #tpu.memory_space<vmem>>, %arg5: memref<8x128xf32, #tpu.memory_space<vmem>>, %arg6: memref<8x128xf32, #tpu.memory_space<vmem>>) attributes {dimension_semantics = [#tpu.dimension_semantics<parallel>, #tpu.dimension_semantics<arbitrary>], iteration_bounds = array<i64: 2, 8>, scalar_prefetch = 0 : i64, scratch_operands = 0 : i64, tpu.core_type = #tpu.core_type<tc>, window_params = [{transform_indices = @transform_0, window_bounds = array<i64: 1, 36, 9, 4>}, {pipeline_mode = #tpu.pipeline_mode<synchronous>, transform_indices = @transform_1, window_bounds = array<i64: 9, 4, 128>}, {transform_indices = @transform_2, window_bounds = array<i64: 8, 128>}, {transform_indices = @transform_3, window_bounds = array<i64: 8, 128>}, {transform_indices = @transform_4, window_bounds = array<i64: 8, 128>}]} {
    %c0_i32 = arith.constant 0 : i32
    %0 = arith.cmpi eq, %arg1, %c0_i32 : i32
    %1 = arith.extui %0 : i1 to i32
    %c0_i32_0 = arith.constant 0 : i32
    %2 = arith.cmpi ne, %1, %c0_i32_0 : i32
    scf.if %2 {
      %cst_69 = arith.constant 0.000000e+00 : f32
      %84 = vector.broadcast %cst_69 : f32 to vector<8x128xf32>
      %c0_70 = arith.constant 0 : index
      %c0_71 = arith.constant 0 : index
      %85 = vector.load %arg5[%c0_70, %c0_71] : memref<8x128xf32, #tpu.memory_space<vmem>>, vector<8x128xf32>
      tpu.vector_store %arg5[%c0_70, %c0_71], %84 {strides = array<i32>} : memref<8x128xf32, #tpu.memory_space<vmem>>, vector<8x128xf32>,
      %cst_72 = arith.constant 0.000000e+00 : f32
      %86 = vector.broadcast %cst_72 : f32 to vector<8x128xf32>
      %c0_73 = arith.constant 0 : index
      %c0_74 = arith.constant 0 : index
      %87 = vector.load %arg6[%c0_73, %c0_74] : memref<8x128xf32, #tpu.memory_space<vmem>>, vector<8x128xf32>
      tpu.vector_store %arg6[%c0_73, %c0_74], %86 {strides = array<i32>} : memref<8x128xf32, #tpu.memory_space<vmem>>, vector<8x128xf32>,
    } else {
    }
    %cst = arith.constant 0.000000e+00 : f32
    %3 = vector.broadcast %cst : f32 to vector<8x128xf32>
    %c0_i32_1 = arith.constant 0 : i32
    %4 = arith.addi %arg1, %c0_i32_1 : i32
    %c0 = arith.constant 0 : index
    %5 = arith.index_cast %4 : i32 to index
    %c0_2 = arith.constant 0 : index
    %c0_3 = arith.constant 0 : index
    %6 = vector.load %arg2[%c0, %5, %c0_2, %c0_3] : memref<1x36x9x4xbf16, #tpu.memory_space<vmem>>, vector<1x1x8x4xbf16>
    %7 = vector.shape_cast %6 : vector<1x1x8x4xbf16> to vector<8x4xbf16>
    %c0_4 = arith.constant 0 : index
    %c0_5 = arith.constant 0 : index
    %c0_6 = arith.constant 0 : index
    %8 = vector.load %arg3[%c0_4, %c0_5, %c0_6] : memref<9x4x128xbf16, #tpu.memory_space<vmem>>, vector<1x4x128xbf16>
    %9 = vector.shape_cast %8 : vector<1x4x128xbf16> to vector<4x128xbf16>
    %cst_7 = arith.constant dense<0.000000e+00> : vector<8x128xf32>
    %10 = tpu.matmul %7, %9, %cst_7 {dimension_numbers = #tpu.dot_dimension_numbers<[1], [0], [0], [1], [0, 0, 1, 1], [], []>} : vector<8x4xbf16>, vector<4x128xbf16>, vector<8x128xf32> -> vector<8x128xf32>
    %11 = arith.addf %3, %10 : vector<8x128xf32>
    %c9_i32 = arith.constant 9 : i32
    %12 = arith.addi %arg1, %c9_i32 : i32
    %c0_8 = arith.constant 0 : index
    %13 = arith.index_cast %12 : i32 to index
    %c0_9 = arith.constant 0 : index
    %c0_10 = arith.constant 0 : index
    %14 = vector.load %arg2[%c0_8, %13, %c0_9, %c0_10] : memref<1x36x9x4xbf16, #tpu.memory_space<vmem>>, vector<1x1x8x4xbf16>
    %15 = vector.shape_cast %14 : vector<1x1x8x4xbf16> to vector<8x4xbf16>
    %c1 = arith.constant 1 : index
    %c0_11 = arith.constant 0 : index
    %c0_12 = arith.constant 0 : index
    %16 = vector.load %arg3[%c1, %c0_11, %c0_12] : memref<9x4x128xbf16, #tpu.memory_space<vmem>>, vector<1x4x128xbf16>
    %17 = vector.shape_cast %16 : vector<1x4x128xbf16> to vector<4x128xbf16>
    %cst_13 = arith.constant dense<0.000000e+00> : vector<8x128xf32>
    %18 = tpu.matmul %15, %17, %cst_13 {dimension_numbers = #tpu.dot_dimension_numbers<[1], [0], [0], [1], [0, 0, 1, 1], [], []>} : vector<8x4xbf16>, vector<4x128xbf16>, vector<8x128xf32> -> vector<8x128xf32>
    %19 = arith.addf %11, %18 : vector<8x128xf32>
    %c0_i32_14 = arith.constant 0 : i32
    %20 = arith.addi %arg1, %c0_i32_14 : i32
    %c0_15 = arith.constant 0 : index
    %21 = arith.index_cast %20 : i32 to index
    %c1_16 = arith.constant 1 : index
    %c0_17 = arith.constant 0 : index
    %22 = vector.load %arg2[%c0_15, %21, %c1_16, %c0_17] : memref<1x36x9x4xbf16, #tpu.memory_space<vmem>>, vector<1x1x8x4xbf16>
    %23 = vector.shape_cast %22 : vector<1x1x8x4xbf16> to vector<8x4xbf16>
    %c2 = arith.constant 2 : index
    %c0_18 = arith.constant 0 : index
    %c0_19 = arith.constant 0 : index
    %24 = vector.load %arg3[%c2, %c0_18, %c0_19] : memref<9x4x128xbf16, #tpu.memory_space<vmem>>, vector<1x4x128xbf16>
    %25 = vector.shape_cast %24 : vector<1x4x128xbf16> to vector<4x128xbf16>
    %cst_20 = arith.constant dense<0.000000e+00> : vector<8x128xf32>
    %26 = tpu.matmul %23, %25, %cst_20 {dimension_numbers = #tpu.dot_dimension_numbers<[1], [0], [0], [1], [0, 0, 1, 1], [], []>} : vector<8x4xbf16>, vector<4x128xbf16>, vector<8x128xf32> -> vector<8x128xf32>
    %27 = arith.addf %19, %26 : vector<8x128xf32>
    %c18_i32 = arith.constant 18 : i32
    %28 = arith.addi %arg1, %c18_i32 : i32
    %c0_21 = arith.constant 0 : index
    %29 = arith.index_cast %28 : i32 to index
    %c0_22 = arith.constant 0 : index
    %c0_23 = arith.constant 0 : index
    %30 = vector.load %arg2[%c0_21, %29, %c0_22, %c0_23] : memref<1x36x9x4xbf16, #tpu.memory_space<vmem>>, vector<1x1x8x4xbf16>
    %31 = vector.shape_cast %30 : vector<1x1x8x4xbf16> to vector<8x4xbf16>
    %c3 = arith.constant 3 : index
    %c0_24 = arith.constant 0 : index
    %c0_25 = arith.constant 0 : index
    %32 = vector.load %arg3[%c3, %c0_24, %c0_25] : memref<9x4x128xbf16, #tpu.memory_space<vmem>>, vector<1x4x128xbf16>
    %33 = vector.shape_cast %32 : vector<1x4x128xbf16> to vector<4x128xbf16>
    %cst_26 = arith.constant dense<0.000000e+00> : vector<8x128xf32>
    %34 = tpu.matmul %31, %33, %cst_26 {dimension_numbers = #tpu.dot_dimension_numbers<[1], [0], [0], [1], [0, 0, 1, 1], [], []>} : vector<8x4xbf16>, vector<4x128xbf16>, vector<8x128xf32> -> vector<8x128xf32>
    %35 = arith.addf %27, %34 : vector<8x128xf32>
    %c27_i32 = arith.constant 27 : i32
    %36 = arith.addi %arg1, %c27_i32 : i32
    %c0_27 = arith.constant 0 : index
    %37 = arith.index_cast %36 : i32 to index
    %c0_28 = arith.constant 0 : index
    %c0_29 = arith.constant 0 : index
    %38 = vector.load %arg2[%c0_27, %37, %c0_28, %c0_29] : memref<1x36x9x4xbf16, #tpu.memory_space<vmem>>, vector<1x1x8x4xbf16>
    %39 = vector.shape_cast %38 : vector<1x1x8x4xbf16> to vector<8x4xbf16>
    %c4 = arith.constant 4 : index
    %c0_30 = arith.constant 0 : index
    %c0_31 = arith.constant 0 : index
    %40 = vector.load %arg3[%c4, %c0_30, %c0_31] : memref<9x4x128xbf16, #tpu.memory_space<vmem>>, vector<1x4x128xbf16>
    %41 = vector.shape_cast %40 : vector<1x4x128xbf16> to vector<4x128xbf16>
    %cst_32 = arith.constant dense<0.000000e+00> : vector<8x128xf32>
    %42 = tpu.matmul %39, %41, %cst_32 {dimension_numbers = #tpu.dot_dimension_numbers<[1], [0], [0], [1], [0, 0, 1, 1], [], []>} : vector<8x4xbf16>, vector<4x128xbf16>, vector<8x128xf32> -> vector<8x128xf32>
    %43 = arith.addf %35, %42 : vector<8x128xf32>
    %c18_i32_33 = arith.constant 18 : i32
    %44 = arith.addi %arg1, %c18_i32_33 : i32
    %c0_34 = arith.constant 0 : index
    %45 = arith.index_cast %44 : i32 to index
    %c1_35 = arith.constant 1 : index
    %c0_36 = arith.constant 0 : index
    %46 = vector.load %arg2[%c0_34, %45, %c1_35, %c0_36] : memref<1x36x9x4xbf16, #tpu.memory_space<vmem>>, vector<1x1x8x4xbf16>
    %47 = vector.shape_cast %46 : vector<1x1x8x4xbf16> to vector<8x4xbf16>
    %c5 = arith.constant 5 : index
    %c0_37 = arith.constant 0 : index
    %c0_38 = arith.constant 0 : index
    %48 = vector.load %arg3[%c5, %c0_37, %c0_38] : memref<9x4x128xbf16, #tpu.memory_space<vmem>>, vector<1x4x128xbf16>
    %49 = vector.shape_cast %48 : vector<1x4x128xbf16> to vector<4x128xbf16>
    %cst_39 = arith.constant dense<0.000000e+00> : vector<8x128xf32>
    %50 = tpu.matmul %47, %49, %cst_39 {dimension_numbers = #tpu.dot_dimension_numbers<[1], [0], [0], [1], [0, 0, 1, 1], [], []>} : vector<8x4xbf16>, vector<4x128xbf16>, vector<8x128xf32> -> vector<8x128xf32>
    %51 = arith.addf %43, %50 : vector<8x128xf32>
    %c1_i32 = arith.constant 1 : i32
    %52 = arith.addi %arg1, %c1_i32 : i32
    %c0_40 = arith.constant 0 : index
    %53 = arith.index_cast %52 : i32 to index
    %c0_41 = arith.constant 0 : index
    %c0_42 = arith.constant 0 : index
    %54 = vector.load %arg2[%c0_40, %53, %c0_41, %c0_42] : memref<1x36x9x4xbf16, #tpu.memory_space<vmem>>, vector<1x1x8x4xbf16>
    %55 = vector.shape_cast %54 : vector<1x1x8x4xbf16> to vector<8x4xbf16>
    %c6 = arith.constant 6 : index
    %c0_43 = arith.constant 0 : index
    %c0_44 = arith.constant 0 : index
    %56 = vector.load %arg3[%c6, %c0_43, %c0_44] : memref<9x4x128xbf16, #tpu.memory_space<vmem>>, vector<1x4x128xbf16>
    %57 = vector.shape_cast %56 : vector<1x4x128xbf16> to vector<4x128xbf16>
    %cst_45 = arith.constant dense<0.000000e+00> : vector<8x128xf32>
    %58 = tpu.matmul %55, %57, %cst_45 {dimension_numbers = #tpu.dot_dimension_numbers<[1], [0], [0], [1], [0, 0, 1, 1], [], []>} : vector<8x4xbf16>, vector<4x128xbf16>, vector<8x128xf32> -> vector<8x128xf32>
    %59 = arith.addf %51, %58 : vector<8x128xf32>
    %c10_i32 = arith.constant 10 : i32
    %60 = arith.addi %arg1, %c10_i32 : i32
    %c0_46 = arith.constant 0 : index
    %61 = arith.index_cast %60 : i32 to index
    %c0_47 = arith.constant 0 : index
    %c0_48 = arith.constant 0 : index
    %62 = vector.load %arg2[%c0_46, %61, %c0_47, %c0_48] : memref<1x36x9x4xbf16, #tpu.memory_space<vmem>>, vector<1x1x8x4xbf16>
    %63 = vector.shape_cast %62 : vector<1x1x8x4xbf16> to vector<8x4xbf16>
    %c7 = arith.constant 7 : index
    %c0_49 = arith.constant 0 : index
    %c0_50 = arith.constant 0 : index
    %64 = vector.load %arg3[%c7, %c0_49, %c0_50] : memref<9x4x128xbf16, #tpu.memory_space<vmem>>, vector<1x4x128xbf16>
    %65 = vector.shape_cast %64 : vector<1x4x128xbf16> to vector<4x128xbf16>
    %cst_51 = arith.constant dense<0.000000e+00> : vector<8x128xf32>
    %66 = tpu.matmul %63, %65, %cst_51 {dimension_numbers = #tpu.dot_dimension_numbers<[1], [0], [0], [1], [0, 0, 1, 1], [], []>} : vector<8x4xbf16>, vector<4x128xbf16>, vector<8x128xf32> -> vector<8x128xf32>
    %67 = arith.addf %59, %66 : vector<8x128xf32>
    %c1_i32_52 = arith.constant 1 : i32
    %68 = arith.addi %arg1, %c1_i32_52 : i32
    %c0_53 = arith.constant 0 : index
    %69 = arith.index_cast %68 : i32 to index
    %c1_54 = arith.constant 1 : index
    %c0_55 = arith.constant 0 : index
    %70 = vector.load %arg2[%c0_53, %69, %c1_54, %c0_55] : memref<1x36x9x4xbf16, #tpu.memory_space<vmem>>, vector<1x1x8x4xbf16>
    %71 = vector.shape_cast %70 : vector<1x1x8x4xbf16> to vector<8x4xbf16>
    %c8 = arith.constant 8 : index
    %c0_56 = arith.constant 0 : index
    %c0_57 = arith.constant 0 : index
    %72 = vector.load %arg3[%c8, %c0_56, %c0_57] : memref<9x4x128xbf16, #tpu.memory_space<vmem>>, vector<1x4x128xbf16>
    %73 = vector.shape_cast %72 : vector<1x4x128xbf16> to vector<4x128xbf16>
    %cst_58 = arith.constant dense<0.000000e+00> : vector<8x128xf32>
    %74 = tpu.matmul %71, %73, %cst_58 {dimension_numbers = #tpu.dot_dimension_numbers<[1], [0], [0], [1], [0, 0, 1, 1], [], []>} : vector<8x4xbf16>, vector<4x128xbf16>, vector<8x128xf32> -> vector<8x128xf32>
    %75 = arith.addf %67, %74 : vector<8x128xf32>
    %c0_59 = arith.constant 0 : index
    %c0_60 = arith.constant 0 : index
    %76 = vector.load %arg4[%c0_59, %c0_60] : memref<8x128xf32, #tpu.memory_space<vmem>>, vector<8x128xf32>
    tpu.vector_store %arg4[%c0_59, %c0_60], %75 {strides = array<i32>} : memref<8x128xf32, #tpu.memory_space<vmem>>, vector<8x128xf32>,
    %c0_61 = arith.constant 0 : index
    %c0_62 = arith.constant 0 : index
    %77 = vector.load %arg5[%c0_61, %c0_62] : memref<8x128xf32, #tpu.memory_space<vmem>>, vector<8x128xf32>
    %78 = arith.addf %77, %75 : vector<8x128xf32>
    %c0_63 = arith.constant 0 : index
    %c0_64 = arith.constant 0 : index
    %79 = vector.load %arg5[%c0_63, %c0_64] : memref<8x128xf32, #tpu.memory_space<vmem>>, vector<8x128xf32>
    tpu.vector_store %arg5[%c0_63, %c0_64], %78 {strides = array<i32>} : memref<8x128xf32, #tpu.memory_space<vmem>>, vector<8x128xf32>,
    %c0_65 = arith.constant 0 : index
    %c0_66 = arith.constant 0 : index
    %80 = vector.load %arg6[%c0_65, %c0_66] : memref<8x128xf32, #tpu.memory_space<vmem>>, vector<8x128xf32>
    %81 = arith.mulf %75, %75 : vector<8x128xf32>
    %82 = arith.addf %80, %81 : vector<8x128xf32>
    %c0_67 = arith.constant 0 : index
    %c0_68 = arith.constant 0 : index
    %83 = vector.load %arg6[%c0_67, %c0_68] : memref<8x128xf32, #tpu.memory_space<vmem>>, vector<8x128xf32>
    tpu.vector_store %arg6[%c0_67, %c0_68], %82 {strides = array<i32>} : memref<8x128xf32, #tpu.memory_space<vmem>>, vector<8x128xf32>,
    return
  }
  func.func @transform_0(%arg0: i32, %arg1: i32) -> (i32, i32, i32, i32) {
    %c0_i32 = arith.constant 0 : i32
    %c0_i32_0 = arith.constant 0 : i32
    %c0_i32_1 = arith.constant 0 : i32
    %c0_i32_2 = arith.constant 0 : i32
    return %arg0, %c0_i32, %c0_i32_0, %c0_i32_1 : i32, i32, i32, i32
  }
  func.func @transform_1(%arg0: i32, %arg1: i32) -> (i32, i32, i32) {
    %c0_i32 = arith.constant 0 : i32
    %c0_i32_0 = arith.constant 0 : i32
    %c0_i32_1 = arith.constant 0 : i32
    %c0_i32_2 = arith.constant 0 : i32
    return %c0_i32, %c0_i32_0, %c0_i32_1 : i32, i32, i32
  }
  func.func @transform_2(%arg0: i32, %arg1: i32) -> (i32, i32) {
    %c8_i32 = arith.constant 8 : i32
    %0 = arith.muli %arg0, %c8_i32 : i32
    %1 = arith.addi %0, %arg1 : i32
    %c0_i32 = arith.constant 0 : i32
    %c0_i32_0 = arith.constant 0 : i32
    return %1, %c0_i32 : i32, i32
  }
  func.func @transform_3(%arg0: i32, %arg1: i32) -> (i32, i32) {
    %c0_i32 = arith.constant 0 : i32
    %c0_i32_0 = arith.constant 0 : i32
    return %arg0, %c0_i32 : i32, i32
  }
  func.func @transform_4(%arg0: i32, %arg1: i32) -> (i32, i32) {
    %c0_i32 = arith.constant 0 : i32
    %c0_i32_0 = arith.constant 0 : i32
    return %arg0, %c0_i32 : i32, i32
  }
}

module attributes {stable_mosaic.version = 11 : i64} {
  func.func @_bn_relu_kernel(%arg0: i32, %arg1: memref<128x128xf32, #tpu.memory_space<vmem>>, %arg2: memref<1x128xf32, #tpu.memory_space<vmem>>, %arg3: memref<1x128xf32, #tpu.memory_space<vmem>>, %arg4: memref<128x128xf32, #tpu.memory_space<vmem>>) attributes {dimension_semantics = [#tpu.dimension_semantics<parallel>], iteration_bounds = array<i64: 1>, scalar_prefetch = 0 : i64, scratch_operands = 0 : i64, tpu.core_type = #tpu.core_type<tc>, window_params = [{transform_indices = @transform_0, window_bounds = array<i64: 128, 128>}, {pipeline_mode = #tpu.pipeline_mode<synchronous>, transform_indices = @transform_1, window_bounds = array<i64: 1, 128>}, {pipeline_mode = #tpu.pipeline_mode<synchronous>, transform_indices = @transform_2, window_bounds = array<i64: 1, 128>}, {transform_indices = @transform_3, window_bounds = array<i64: 128, 128>}]} {
    %c0 = arith.constant 0 : index
    %c0_0 = arith.constant 0 : index
    %0 = vector.load %arg1[%c0, %c0_0] : memref<128x128xf32, #tpu.memory_space<vmem>>, vector<128x128xf32>
    %c0_1 = arith.constant 0 : index
    %c0_2 = arith.constant 0 : index
    %1 = vector.load %arg2[%c0_1, %c0_2] : memref<1x128xf32, #tpu.memory_space<vmem>>, vector<1x128xf32>
    %2 = vector.broadcast %1 : vector<1x128xf32> to vector<128x128xf32>
    %3 = arith.mulf %0, %2 : vector<128x128xf32>
    %c0_3 = arith.constant 0 : index
    %c0_4 = arith.constant 0 : index
    %4 = vector.load %arg3[%c0_3, %c0_4] : memref<1x128xf32, #tpu.memory_space<vmem>>, vector<1x128xf32>
    %5 = vector.broadcast %4 : vector<1x128xf32> to vector<128x128xf32>
    %6 = arith.addf %3, %5 : vector<128x128xf32>
    %cst = arith.constant 0.000000e+00 : f32
    %7 = vector.broadcast %cst : f32 to vector<128x128xf32>
    %8 = arith.maximumf %6, %7 : vector<128x128xf32>
    %c0_5 = arith.constant 0 : index
    %c0_6 = arith.constant 0 : index
    %9 = vector.load %arg4[%c0_5, %c0_6] : memref<128x128xf32, #tpu.memory_space<vmem>>, vector<128x128xf32>
    tpu.vector_store %arg4[%c0_5, %c0_6], %8 {strides = array<i32>} : memref<128x128xf32, #tpu.memory_space<vmem>>, vector<128x128xf32>,
    return
  }
  func.func @transform_0(%arg0: i32) -> (i32, i32) {
    %c0_i32 = arith.constant 0 : i32
    %c0_i32_0 = arith.constant 0 : i32
    return %arg0, %c0_i32 : i32, i32
  }
  func.func @transform_1(%arg0: i32) -> (i32, i32) {
    %c0_i32 = arith.constant 0 : i32
    %c0_i32_0 = arith.constant 0 : i32
    %c0_i32_1 = arith.constant 0 : i32
    return %c0_i32, %c0_i32_0 : i32, i32
  }
  func.func @transform_2(%arg0: i32) -> (i32, i32) {
    %c0_i32 = arith.constant 0 : i32
    %c0_i32_0 = arith.constant 0 : i32
    %c0_i32_1 = arith.constant 0 : i32
    return %c0_i32, %c0_i32_0 : i32, i32
  }
  func.func @transform_3(%arg0: i32) -> (i32, i32) {
    %c0_i32 = arith.constant 0 : i32
    %c0_i32_0 = arith.constant 0 : i32
    return %arg0, %c0_i32 : i32, i32
  }
}

</mosaic_0001>

<bundles_post_ra>
// kernel: conv_block_forward.3
= control target key start
LH: loop header
LB: loop body
LE: loop exit
PB: predicated region body
PF: predicated region fallthrough
CT: control target
= control target key end

     0   :  { %s248_s0 = inlined_call_operand.vmem [shape: f32[128,128], index: 0, kind: input, shape index: {}]   ;;  %s249_s1 = inlined_call_operand.vmem [shape: f32[1,128], index: 1, kind: input, shape index: {}]   ;;  %s250_s2 = inlined_call_operand.vmem [shape: f32[1,128], index: 2, kind: input, shape index: {}]   ;;  %s251_s3 = inlined_call_operand.vmem [shape: f32[128,128], index: 3, kind: output, shape index: {}]  }
   0x1   :  { %v14_v0 = vld [vmem:[%s248_s0] sm:$0xff]  ;;  %v15_v3 = vld [vmem:[%s248_s0 + $0x8] sm:$0xff]  ;;  %v16_v6 = vld [vmem:[%s248_s0 + $0x10] sm:$0xff] }
   0x2   :  { %v106_v1 = vld [vmem:[%s249_s1] ss:$0 sm:$0xff]  ;;  %v17_v7 = vld [vmem:[%s248_s0 + $0x18] sm:$0xff]  ;;  %v19_v12 = vld [vmem:[%s248_s0 + $0x28] sm:$0xff] }
   0x3   :  { %v137_v2 = vld [vmem:[%s250_s2] ss:$0 sm:$0xff]  ;;  %v34_v4 = vmul.f32 %v106_v1, %v14_v0  ;;  %v35_v5 = vmul.f32 %v106_v1, %v15_v3  ;;  %v36_v9 = vmul.f32 %v106_v1, %v16_v6  ;;  %v37_v10 = vmul.f32 %v106_v1, %v17_v7  ;;  %v20_v13 = vld [vmem:[%s248_s0 + $0x30] sm:$0xff]  ;;  %v21_v14 = vld [vmem:[%s248_s0 + $0x38] sm:$0xff] }
   0x4   :  { %v18_v8 = vld [vmem:[%s248_s0 + $0x20] sm:$0xff]  ;;  %v39_v17 = vmul.f32 %v106_v1, %v19_v12  ;;  %v40_v18 = vmul.f32 %v106_v1, %v20_v13  ;;  %v41_v22 = vmul.f32 %v106_v1, %v21_v14  ;;  %v23_v24 = vld [vmem:[%s248_s0 + $0x48] sm:$0xff]  ;;  %v24_v29 = vld [vmem:[%s248_s0 + $0x50] sm:$0xff] }
   0x5   :  { %v38_v11 = vmul.f32 %v106_v1, %v18_v8  ;;  %v54_v15 = vadd.f32 %v137_v2, %v34_v4  ;;  %v55_v16 = vadd.f32 %v137_v2, %v35_v5  ;;  %v56_v19 = vadd.f32 %v137_v2, %v36_v9  ;;  %v22_v23 = vld [vmem:[%s248_s0 + $0x40] sm:$0xff]  ;;  %v25_v30 = vld [vmem:[%s248_s0 + $0x58] sm:$0xff]  ;;  %v27_v35 = vld [vmem:[%s248_s0 + $0x68] sm:$0xff] }
   0x6   :  { %v57_v20 = vadd.f32 %v137_v2, %v37_v10  ;;  %v59_v27 = vadd.f32 %v137_v2, %v39_v17  ;;  %v60_v28 = vadd.f32 %v137_v2, %v40_v18  ;;  %v26_v31 = vld [vmem:[%s248_s0 + $0x60] sm:$0xff]  ;;  %v61_v34 = vadd.f32 %v137_v2, %v41_v22  ;;  %v28_v36 = vld [vmem:[%s248_s0 + $0x70] sm:$0xff]  ;;  %v29_v41 = vld [vmem:[%s248_s0 + $0x78] sm:$0xff] }
   0x7   :  { %v58_v21 = vadd.f32 %v137_v2, %v38_v11  ;;  %v70_v25 = vmax.f32 %v54_v15, 0.0  ;;  %v71_v26 = vmax.f32 %v55_v16, 0.0  ;;  %v72_v32 = vmax.f32 %v56_v19, 0.0 }
   0x8   :  { %v73_v33 = vmax.f32 %v57_v20, 0.0  ;;  %v75_v38 = vmax.f32 %v59_v27, 0.0  ;;  %v42_v39 = vmul.f32 %v106_v1, %v22_v23  ;;  %v43_v40 = vmul.f32 %v106_v1, %v23_v24 }
   0x9   :  { %86 = vst [vmem:[%s251_s3] sm:$0xff] %v70_v25  ;;  %v74_v37 = vmax.f32 %v58_v21, 0.0  ;;  %v76_v42 = vmax.f32 %v60_v28, 0.0  ;;  %v44_v43 = vmul.f32 %v106_v1, %v24_v29  ;;  %v45_v44 = vmul.f32 %v106_v1, %v25_v30 }
   0xa   :  { %87 = vst [vmem:[%s251_s3 + $0x8] sm:$0xff] %v71_v26  ;;  %v46_v45 = vmul.f32 %v106_v1, %v26_v31  ;;  %v62_v46 = vadd.f32 %v137_v2, %v42_v39  ;;  %v63_v47 = vadd.f32 %v137_v2, %v43_v40  ;;  %v47_v48 = vmul.f32 %v106_v1, %v27_v35 }
   0xb   :  { %88 = vst [vmem:[%s251_s3 + $0x10] sm:$0xff] %v72_v32  ;;  %v48_v49 = vmul.f32 %v106_v1, %v28_v36  ;;  %v77_v50 = vmax.f32 %v61_v34, 0.0  ;;  %v64_v51 = vadd.f32 %v137_v2, %v44_v43  ;;  %v65_v52 = vadd.f32 %v137_v2, %v45_v44 }
   0xc   :  { %89 = vst [vmem:[%s251_s3 + $0x18] sm:$0xff] %v73_v33  ;;  %v49_v53 = vmul.f32 %v106_v1, %v29_v41  ;;  %v78_v54 = vmax.f32 %v62_v46, 0.0  ;;  %v66_v55 = vadd.f32 %v137_v2, %v46_v45  ;;  %v79_v56 = vmax.f32 %v63_v47, 0.0 }
   0xd   :  { %90 = vst [vmem:[%s251_s3 + $0x20] sm:$0xff] %v74_v37  ;;  %v67_v57 = vadd.f32 %v137_v2, %v47_v48  ;;  %v80_v58 = vmax.f32 %v64_v51, 0.0  ;;  %v68_v59 = vadd.f32 %v137_v2, %v48_v49  ;;  %v81_v60 = vmax.f32 %v65_v52, 0.0 }
   0xe   :  { %91 = vst [vmem:[%s251_s3 + $0x28] sm:$0xff] %v75_v38  ;;  %v69_v61 = vadd.f32 %v137_v2, %v49_v53  ;;  %v82_v62 = vmax.f32 %v66_v55, 0.0 }
   0xf   :  { %92 = vst [vmem:[%s251_s3 + $0x30] sm:$0xff] %v76_v42  ;;  %v83_v63 = vmax.f32 %v67_v57, 0.0  ;;  %v84_v0 = vmax.f32 %v68_v59, 0.0 }
  0x10   :  { %93 = vst [vmem:[%s251_s3 + $0x38] sm:$0xff] %v77_v50  ;;  %v85_v1 = vmax.f32 %v69_v61, 0.0 }
  0x11   :  { %94 = vst [vmem:[%s251_s3 + $0x40] sm:$0xff] %v78_v54 }
  0x12   :  { %95 = vst [vmem:[%s251_s3 + $0x48] sm:$0xff] %v79_v56 }
  0x13   :  { %96 = vst [vmem:[%s251_s3 + $0x50] sm:$0xff] %v80_v58 }
  0x14   :  { %97 = vst [vmem:[%s251_s3 + $0x58] sm:$0xff] %v81_v60 }
  0x15   :  { %98 = vst [vmem:[%s251_s3 + $0x60] sm:$0xff] %v82_v62 }
  0x16   :  { %99 = vst [vmem:[%s251_s3 + $0x68] sm:$0xff] %v83_v63 }
  0x17   :  { %100 = vst [vmem:[%s251_s3 + $0x70] sm:$0xff] %v84_v0 }
  0x18   :  { %101 = vst [vmem:[%s251_s3 + $0x78] sm:$0xff] %v85_v1 }

// kernel: conv_block_forward.2
= control target key start
LH: loop header
LB: loop body
LE: loop exit
PB: predicated region body
PF: predicated region fallthrough
CT: control target
= control target key end

     0   :  { %s844_s15 = smov 0   ;;  %s846_s16 = smov 0   ;;  %s978_s0 = inlined_call_operand.vmem [shape: bf16[2,36,9,4], index: 0, kind: input, shape index: {}]   ;;  %s979_s1 = inlined_call_operand.vmem [shape: bf16[9,4,128], index: 1, kind: input, shape index: {}]   ;;  %s980_s2 = inlined_call_operand.vmem [shape: f32[128,128], index: 2, kind: output, shape index: {0}]   ;;  %s981_s3 = inlined_call_operand.vmem [shape: f32[16,128], index: 3, kind: output, shape index: {1}]   ;;  %s982_s4 = inlined_call_operand.vmem [shape: f32[16,128], index: 4, kind: output, shape index: {2}]  }
   0x1   :  { %s848_s17 = smov 0   ;;  %s850_s18 = smov 0  }
   0x2   :  { %s852_s19 = smov 0  }
   0x3 LB: > { %s24_s20 = sadd.s32 1, %s808_s17  ;;  %s27_s21 = sadd.s32 1, %s812_s18  ;;  %s816_s19 = sphi %s852_s19, %s15_s19   ;;  %s812_s18 = sphi %s850_s18, %s986_s18   ;;  %s808_s17 = sphi %s848_s17, %s985_s17   ;;  %s804_s16 = sphi %s846_s16, %s984_s16   ;;  %s800_s15 = sphi %s844_s15, %s983_s15  }
   0x4   : > { %p25_p0 = scmp.ge.s32.totalorder %s24_s20, 8  ;;  %p678_p1 = scmp.ge.s32.totalorder %s816_s19, 1 }
   0x5   : > { %p183_p2 = scmp.lt.s32.totalorder %s816_s19, 17 }
   0x6   : > { %s988_s20 = smov (%p25_p0, %s24_s20), 0  ;;  %s990_s21 = smov (!%p25_p0, %s27_s21), %s812_s18 }
   0x7   : > { %p184_p3 = pnand %p678_p1, %p183_p2  ;;  %p29_p4 = scmp.ge.s32.totalorder %s990_s21, 2 }
   0x8   : > { %p218_p5 = scmp.lt.s32.totalorder (!%p184_p3), %s804_s16, 1  ;;  %s680_s22 = sshll.u32 (!%p184_p3), %s804_s16, 3 }
   0x9   : > { %s992_s21 = smov (%p29_p4, %s990_s21), 0  ;;  %187 = sbr.rel (%p184_p3) target bundleno = 198 (0xc6), region = 28 }
   0xa   : > { %s224_s23 = sadd.s32 (!%p184_p3), %s800_s15, %s680_s22  ;;  %p684_p7 = scmp.ne.s32.totalorder (!%p184_p3), %s800_s15, 0 }
   0xb   : > { %p225_p6 = scmp.lt.s32.totalorder (!%p184_p3), %s224_s23, 15 }
   0xe   : > { %s994_s16 = smov (!%p218_p5, %s804_s16), 1  ;;  %s996_s23 = smov (!%p225_p6, %s224_s23), 15 }
   0xf   : > { %s736_s24 = smul.u32 288, %s994_s16  ;;  %s682_s25 = sshll.u32 %s994_s16, 3 }
  0x10   : > { %s883_s5 = scalar_lea.vmem %s981_s3, %s682_s25  ;;  %s681_s6 = sshll.u32 %s996_s23, 3 }
  0x11   : > { %s222_s28 = scalar_lea.vmem %s978_s0, %s736_s24  ;;  %s888_s9 = scalar_lea.vmem %s982_s4, %s682_s25 }
  0x12   : > { %s893_s12 = scalar_lea.vmem %s980_s2, %s681_s6  ;;  %243 = sbr.rel (%p684_p7) target bundleno = 26 (0x1a), region = 32 }
  0x17   : > { %v818_v0 = vmov 0.0  }
  0x18   : > { %244 = vst [vmem:[%s883_s5] sm:$0xff] %v818_v0 }
  0x19   : > { %245 = vst [vmem:[%s888_s9] sm:$0xff] %v818_v0 }
  0x1a PF: > { %v689_v1 = vld [vmem:[%s979_s1 + $0x2] sm:$0x3]  ;;  %vm262_vm0 = vcmask 1041408   ;;  %v250_v2 = vld [vmem:[%s979_s1] sm:$0x3]  ;;  %s732_s23 = sshll.u32 %s800_s15, 3 }
  0x1b   : > { %v264_v3 = vsel %vm262_vm0, %v689_v1, 0  ;;  %v283_v4 = vsel %vm262_vm0, %v250_v2, 0  ;;  %v700_v5 = vld [vmem:[%s979_s1 + $0x6] sm:$0x3]  ;;  %s910_s26 = scalar_lea.vmem %s222_s28, %s732_s23  ;;  %vm258_vm1 = vcmask 31744  }
  0x1c   : > { %273 = vmatpush.bf16.msra.mxu0 %v264_v3  ;;  %292 = vmatpush.bf16.msra.mxu1 %v283_v4  ;;  %v345_v6 = vsel %vm262_vm0, %v700_v5, 0  ;;  %v688_v7 = vld [vmem:[%s910_s26 + $0x48] sm:$0xf]  ;;  %v249_v8 = vld [vmem:[%s910_s26] sm:$0xf] }
  0x1d   : > { %354 = vmatpush.bf16.msra.mxu3 %v345_v6  ;;  %v704_v9 = vld [vmem:[%s979_s1 + $0x8] sm:$0x3]  ;;  %v699_v10 = vld [vmem:[%s910_s26 + $0x90] sm:$0xf]  ;;  %v692_v11 = vld [vmem:[%s979_s1 + $0x4] sm:$0x3] }
  0x1e   : > { %v372_v12 = vsel %vm262_vm0, %v704_v9, 0  ;;  %v318_v13 = vsel %vm262_vm0, %v692_v11, 0  ;;  %v695_v14 = vld [vmem:[%s910_s26] sm:$0xf]  ;;  %v733_v15 = vld [vmem:[%s910_s26] sm:$0x10] }
  0x1f   : > { %690 = vmatmul.msk.bf16.vlgmr.msra.gmra.mxu0 %vm258_vm1, %v688_v7  ;;  %691 = vmatmul.msk.bf16.vlgmr.msra.gmra.mxu1 %vm258_vm1, %v249_v8  ;;  %v696_v16 = vor.u32 %v733_v15, %v695_v14  ;;  %v716_v17 = vld [vmem:[%s979_s1 + $0xc] sm:$0x3]  ;;  %v720_v18 = vld [vmem:[%s979_s1 + $0xe] sm:$0x3]  ;;  %v708_v19 = vld [vmem:[%s979_s1 + $0xa] sm:$0x3] }
  0x20   : > { %381 = vmatpush.bf16.msrb.mxu0 %v372_v12  ;;  %701 = vmatmul.msk.bf16.vlgmr.msra.gmra.mxu3 %vm258_vm1, %v699_v10  ;;  %v435_v20 = vsel %vm262_vm0, %v716_v17, 0  ;;  %v462_v21 = vsel %vm262_vm0, %v720_v18, 0  ;;  %v408_v22 = vsel %vm262_vm0, %v708_v19, 0  ;;  %v724_v25 = vld [vmem:[%s979_s1 + $0x10] sm:$0x3]  ;;  %v515_v5 = vld [vmem:[%s883_s5] sm:$0xff] }
  0x21   : > { %327 = vmatpush.bf16.msra.mxu2 %v318_v13  ;;  %v308_v23 = vshrl.u32 %v696_v16, 16  ;;  %v310_v24 = vshll.u32 %v696_v16, 16  ;;  %471 = vmatpush.bf16.msrb.mxu3 %v462_v21  ;;  %v498_v26 = vsel %vm262_vm0, %v724_v25, 0  ;;  %v711_v27 = vld [vmem:[%s910_s26 + $0x90] sm:$0xf]  ;;  %v518_v7 = vld [vmem:[%s888_s9] sm:$0xff] }
  0x22   : > { %417 = vmatpush.bf16.msrb.mxu1 %v408_v22  ;;  %v734_v28 = vld [vmem:[%s910_s26 + $0x90] sm:$0x10]  ;;  %v703_v36 = vld [vmem:[%s910_s26 + $0xd8] sm:$0xf]  ;;  %v727_v37 = vld [vmem:[%s910_s26 + $0x8] sm:$0xf] }
  0x23   : > { %v312_v29 = vrot.slane %v310_v24, 1  ;;  %v712_v30 = vor.u32 %v734_v28, %v711_v27  ;;  %v735_v38 = vld [vmem:[%s910_s26 + $0x8] sm:$0x10]  ;;  %v719_v39 = vld [vmem:[%s910_s26 + $0x50] sm:$0xf] }
  0x24   : > { %507 = vmatpush.bf16.msra.mxu0 %v498_v26  ;;  %v728_v40 = vor.u32 %v735_v38, %v727_v37  ;;  %v715_v42 = vld [vmem:[%s910_s26 + $0x8] sm:$0xf] }
  0x25   : > { %444 = vmatpush.bf16.msrb.mxu2 %v435_v20  ;;  %v313_v31 = vor.u32 %v312_v29, %v308_v23  ;;  %v400_v32 = vshll.u32 %v712_v30, 16  ;;  %v398_v33 = vshrl.u32 %v712_v30, 16 }
  0x26   : > { %v490_v41 = vshll.u32 %v728_v40, 16  ;;  %v488_v43 = vshrl.u32 %v728_v40, 16 }
  0x27   : > { %697 = vmatmul.msk.bf16.vlgmr.msra.gmra.mxu2 %vm258_vm1, %v313_v31  ;;  %v402_v34 = vrot.slane %v400_v32, 1 }
  0x28   : > { %v492_v44 = vrot.slane %v490_v41, 1 }
  0x29   : > { %v403_v35 = vor.u32 %v402_v34, %v398_v33 }
  0x2a   : > { %v493_v45 = vor.u32 %v492_v44, %v488_v43 }
  0x2f   : > { %705 = vmatmul.msk.bf16.vlgmr.msrb.gmra.mxu0 %vm258_vm1, %v703_v36  ;;  %713 = vmatmul.msk.bf16.vlgmr.msrb.gmra.mxu1 %vm258_vm1, %v403_v35 }
  0x30   : > { %721 = vmatmul.msk.bf16.vlgmr.msrb.gmra.mxu3 %vm258_vm1, %v719_v39 }
  0x37   : > { %717 = vmatmul.msk.bf16.vlgmr.msrb.gmra.mxu2 %vm258_vm1, %v715_v42 }
  0x3f   : > { %729 = vmatmul.msk.bf16.vlgmr.msra.gmra.mxu0 %vm258_vm1, %v493_v45 }
  0x9c   : > { %v275_v46 = vpop.f32.mrf.mxu0  ;;  %v294_v47 = vpop.f32.mrf.mxu1 }
  0x9d   : > { %v295_v52 = vadd.f32 %v294_v47, %v275_v46 }
  0xa3   : > { %v356_v48 = vpop.f32.mrf.mxu3 }
  0xa4   : > { %v277_v49 = vpop.f32.mrf.mxu0  ;;  %v296_v50 = vpop.f32.mrf.mxu1 }
  0xaa   : > { %v329_v51 = vpop.f32.mrf.mxu2 }
  0xab   : > { %v358_v53 = vpop.f32.mrf.mxu3  ;;  %v333_v56 = vadd.f32 %v329_v51, %v295_v52 }
  0xac   : > { %v383_v54 = vpop.f32.mrf.mxu0  ;;  %v419_v55 = vpop.f32.mrf.mxu1 }
  0xad   : > { %v360_v57 = vadd.f32 %v356_v48, %v333_v56 }
  0xaf   : > { %v387_v62 = vadd.f32 %v383_v54, %v360_v57 }
  0xb1   : > { %v423_v63 = vadd.f32 %v419_v55, %v387_v62 }
  0xb2   : > { %v331_v58 = vpop.f32.mrf.mxu2 }
  0xb3   : > { %v473_v59 = vpop.f32.mrf.mxu3 }
  0xb4   : > { %v385_v60 = vpop.f32.mrf.mxu0  ;;  %v421_v61 = vpop.f32.mrf.mxu1 }
  0xba   : > { %v446_v0 = vpop.f32.mrf.mxu2 }
  0xbb   : > { %v450_v1 = vadd.f32 %v446_v0, %v423_v63  ;;  %v475_v2 = vpop.f32.mrf.mxu3 }
  0xbc   : > { %v509_v3 = vpop.f32.mrf.mxu0 }
  0xbd   : > { %v477_v4 = vadd.f32 %v473_v59, %v450_v1 }
  0xbf   : > { %v513_v6 = vadd.f32 %v509_v3, %v477_v4 }
  0xc1   : > { %514 = vst [vmem:[%s893_s12] sm:$0xff] %v513_v6  ;;  %v516_v8 = vadd.f32 %v515_v5, %v513_v6  ;;  %v519_v9 = vmul.f32 %v513_v6, %v513_v6 }
  0xc2   : > { %v448_v10 = vpop.f32.mrf.mxu2 }
  0xc3   : > { %517 = vst [vmem:[%s883_s5] sm:$0xff] %v516_v8  ;;  %v520_v11 = vadd.f32 %v519_v9, %v518_v7 }
  0xc4   : > { %v511_v12 = vpop.f32.mrf.mxu0 }
  0xc5   : > { %521 = vst [vmem:[%s888_s9] sm:$0xff] %v520_v11 }
  0xc6 PF: > { %s15_s19 = sadd.s32 1, %s816_s19   ;;  %s983_s15 = smov %s808_s17 }
  0xc7   : > { %p12_p8 = scmp.ge.s32.totalorder %s15_s19, 18   ;;  %s984_s16 = smov %s812_s18 }
  0xc8   : > { %s985_s17 = smov %s988_s20  ;;  %s986_s18 = smov %s992_s21 }
  0xc9   :  { %14 = sbr.rel (!%p12_p8) target bundleno = 3 (0x3), region = 100 }

</bundles_post_ra>
